<compile_context>
chip_gen: v6e
topology: v6e:2x2x1
jax: 0.10.0
libtpu: 0.0.40
codegen_flags: <defaults>
</compile_context>

<pallas_src>
import jax
import jax.numpy as jnp
from jax.experimental import pallas as pl
from jax.experimental.pallas import tpu as pltpu


def _caps_decoder_kernel(x_ref, g_ref,
                         w1x_ref, b1_ref, w1g_ref,
                         w2_ref, b2_ref,
                         w3_ref, b3_ref,
                         w4_ref, b4_ref,
                         o_ref):
    """One grid step handles pblk primitives (channel-first activations)."""
    pblk = g_ref.shape[0]
    C = w1g_ref.shape[1]

    x = x_ref[...]                                    # (V, BL) bf16, resident

    # conv1 x-part stacked over the pblk primitives: ONE MXU matmul with
    # M = pblk*C (instead of pblk tiny M=C, K=V matmuls); bias added in f32.
    h1_all = (jnp.dot(w1x_ref[0], x, preferred_element_type=jnp.float32)
              + b1_ref[0])                            # (pblk*C, BL) f32

    outs = []
    for j in range(pblk):                             # static unroll, pblk <= 8
        # 2-channel rand-grid contribution on the VPU in f32 (a K=2 matmul
        # would waste the whole systolic array).
        g = g_ref[j]                                  # (2, BL) f32
        wg = w1g_ref[j]                               # (C, 2) f32
        h = (h1_all[j * C:(j + 1) * C, :]
             + wg[:, 0:1] * g[0:1, :]
             + wg[:, 1:2] * g[1:2, :])
        h = jnp.maximum(h, 0.0).astype(jnp.bfloat16)  # relu(bn1(conv1))

        h = jnp.dot(w2_ref[j], h, preferred_element_type=jnp.float32) + b2_ref[j]
        h = jnp.maximum(h, 0.0).astype(jnp.bfloat16)  # relu(bn2(conv2))

        h = jnp.dot(w3_ref[j], h, preferred_element_type=jnp.float32) + b3_ref[j]
        h = jnp.maximum(h, 0.0).astype(jnp.bfloat16)  # relu(bn3(conv3))

        h = jnp.dot(w4_ref[j], h, preferred_element_type=jnp.float32) + b4_ref[j]
        outs.append(h)                                # (3, BL) f32, pre-tanh

    # Pack the pblk primitives sublane-dense (3*pblk rows), one tanh on a
    # dense tile, one dense store per grid step.
    packed = outs[0] if pblk == 1 else jnp.concatenate(outs, axis=0)
    o_ref[0] = jnp.tanh(packed).astype(o_ref.dtype)


def _pick_pblk(P):
    """Largest pblk (<=8) dividing P such that the grid keeps >=4 steps
    (fallback >=2, then >=1): keeps both v7x TensorCores busy and leaves the
    DMA pipeline real work to overlap."""
    for min_steps in (4, 2, 1):
        for d in (8, 4, 2, 1):
            if P % d == 0 and P // d >= min_steps:
                return d
    return 1


def _padded_bytes(block_shape, dtype):
    """Rough VMEM footprint of a block after (8,128) tile padding."""
    shape = [int(d) for d in block_shape]
    shape[-1] = -(-shape[-1] // 128) * 128
    if len(shape) >= 2:
        shape[-2] = -(-shape[-2] // 8) * 8
    n = 1
    for d in shape:
        n *= d
    return n * jnp.dtype(dtype).itemsize


def init_params(key, nb_primitives, bottleneck):
    """Deterministic synthetic parameters for all primitives.

    Conv weights of conv1..conv3 are folded with eval-mode BatchNorm into
    effective (weight, bias).  Returned in canonical per-primitive layout:
      W<i>: (P, Cout, Cin) f32,  B<i>: (P, Cout) f32."""
    C = bottleneck
    dims = [(C, C), (C, C // 2), (C // 2, C // 4), (C // 4, 3)]
    eps = 1e-5
    keys = jax.random.split(key, len(dims))
    params = {}
    for li, ((cin, cout), k) in enumerate(zip(dims, keys)):
        kw, kb, kg, kbe, km, kv = jax.random.split(k, 6)
        W = jax.random.normal(kw, (nb_primitives, cout, cin), jnp.float32)
        W = W * (1.0 / jnp.sqrt(jnp.float32(cin)))
        b = jax.random.normal(kb, (nb_primitives, cout), jnp.float32) * 0.05
        if li < 3:  # conv1..conv3 carry a BatchNorm1d (eval-mode fold)
            gamma = jax.random.uniform(kg, (nb_primitives, cout), jnp.float32, 0.5, 1.5)
            beta = jax.random.normal(kbe, (nb_primitives, cout), jnp.float32) * 0.1
            mean = jax.random.normal(km, (nb_primitives, cout), jnp.float32) * 0.1
            var = jax.random.uniform(kv, (nb_primitives, cout), jnp.float32, 0.5, 1.5)
            scale = gamma / jnp.sqrt(var + eps)
            W = W * scale[:, :, None]
            b = scale * (b - mean) + beta
        params[f"W{li + 1}"] = W
        params[f"B{li + 1}"] = b
    return params


def caps_decoder_forward(x, params, *, latent_caps_size, num_points,
                         grid_key=None, rand_grid=None,
                         out_dtype=jnp.float32):
    """x: (B, latent_caps_size, latent_vec_size) f32 -> (B, 3, num_points).

    `out_dtype=jnp.bfloat16` halves the output writeback traffic if f32 is not
    required downstream."""
    B, L, V = x.shape
    assert L == latent_caps_size
    P = num_points // latent_caps_size
    assert P * latent_caps_size == num_points
    BL = B * L
    C = params["W1"].shape[1]                     # bottleneck = V + 2
    assert params["W1"].shape == (P, C, V + 2)
    C2, C4 = C // 2, C // 4

    pblk = _pick_pblk(P)                          # primitives per grid step
    S = P // pblk                                 # grid steps

    # channel-first x: (V, B*L), column index = b*L + l.  Single bf16 copy,
    # kept VMEM-resident across the whole grid (constant index_map).
    x_cf = jnp.transpose(x, (2, 0, 1)).reshape(V, BL).astype(jnp.bfloat16)

    # rand_grid ~ U[0,1): tiny (P, 2, BL) array, streamed per step.
    if rand_grid is None:
        assert grid_key is not None, "need grid_key or rand_grid"
        rand_grid = jax.random.uniform(grid_key, (P, 2, BL), jnp.float32)
    rand_grid = rand_grid.astype(jnp.float32)
    assert rand_grid.shape == (P, 2, BL)

    # ---- pack parameters into the kernel layout ----
    W1 = params["W1"]
    # conv1 input-channel order is [rand_grid(2), x(V)] (torch.cat order).
    w1g = W1[:, :, :2].astype(jnp.float32)                          # (P, C, 2)  VPU path
    w1x = W1[:, :, 2:].astype(jnp.bfloat16).reshape(S, pblk * C, V)  # stacked MXU path
    b1 = params["B1"].astype(jnp.float32).reshape(S, pblk * C, 1)
    w2 = params["W2"].astype(jnp.bfloat16)                          # (P, C2, C)
    b2 = params["B2"].astype(jnp.float32)[:, :, None]               # (P, C2, 1)
    w3 = params["W3"].astype(jnp.bfloat16)                          # (P, C4, C2)
    b3 = params["B3"].astype(jnp.float32)[:, :, None]
    w4 = params["W4"].astype(jnp.bfloat16)                          # (P, 3, C4)
    b4 = params["B4"].astype(jnp.float32)[:, :, None]

    in_arrays = (x_cf, rand_grid, w1x, b1, w1g, w2, b2, w3, b3, w4, b4)
    blocks = [
        ((V, BL),           lambda s: (0, 0)),        # x_cf: constant -> resident
        ((pblk, 2, BL),     lambda s: (s, 0, 0)),     # rand_grid per step
        ((1, pblk * C, V),  lambda s: (s, 0, 0)),     # stacked conv1 x-weights
        ((1, pblk * C, 1),  lambda s: (s, 0, 0)),     # stacked conv1 bias
        ((pblk, C, 2),      lambda s: (s, 0, 0)),     # conv1 grid-weights (f32)
        ((pblk, C2, C),     lambda s: (s, 0, 0)),     # conv2 w
        ((pblk, C2, 1),     lambda s: (s, 0, 0)),     # conv2 b
        ((pblk, C4, C2),    lambda s: (s, 0, 0)),     # conv3 w
        ((pblk, C4, 1),     lambda s: (s, 0, 0)),     # conv3 b
        ((pblk, 3, C4),     lambda s: (s, 0, 0)),     # conv4 w
        ((pblk, 3, 1),      lambda s: (s, 0, 0)),     # conv4 b
    ]
    in_specs = [pl.BlockSpec(bs, im) for bs, im in blocks]
    out_block = (1, 3 * pblk, BL)
    out_specs = pl.BlockSpec(out_block, lambda s: (s, 0, 0))

    # Explicit scoped-VMEM budget sized to the real working set (double
    # buffers for every streamed block) — v5e's default scoped limit is 16 MiB.
    est = sum(_padded_bytes(bs, a.dtype) for (bs, _), a in zip(blocks, in_arrays))
    est += _padded_bytes(out_block, out_dtype)
    vmem_limit = int(min(max(2 * est + (4 << 20), 16 << 20), 64 << 20))

    out = pl.pallas_call(
        _caps_decoder_kernel,
        out_shape=jax.ShapeDtypeStruct((S, 3 * pblk, BL), out_dtype),
        grid=(S,),
        in_specs=in_specs,
        out_specs=out_specs,
        compiler_params=pltpu.CompilerParams(
            dimension_semantics=("parallel",),
            vmem_limit_bytes=vmem_limit),
    )(*in_arrays)

    # out[s, j*3 + c, b*L + l]  (p = s*pblk + j)  ->  (B, 3, P*L)
    # (== torch.cat(outs, dim=2) ordering: primitive-major points)
    out = out.reshape(S, pblk, 3, B, L)
    out = jnp.transpose(out, (3, 2, 0, 1, 4)).reshape(B, 3, P * L)
    return out


def _reference_forward(x, params, rand_grid, *, latent_caps_size, num_points):
    """Pure-JAX f32 reference with identical (folded) params and rand_grid."""
    B, L, V = x.shape
    P = num_points // latent_caps_size
    xt = jnp.transpose(x, (0, 2, 1))                       # (B, V, L)
    outs = []
    for p in range(P):
        g = rand_grid[p].reshape(2, B, L)                  # columns are b*L + l
        g = jnp.transpose(g, (1, 0, 2))                    # (B, 2, L)
        y = jnp.concatenate([g, xt], axis=1)               # (B, V+2, L)
        h = jnp.einsum("oc,bcl->bol", params["W1"][p], y) + params["B1"][p][None, :, None]
        h = jax.nn.relu(h)
        h = jnp.einsum("oc,bcl->bol", params["W2"][p], h) + params["B2"][p][None, :, None]
        h = jax.nn.relu(h)
        h = jnp.einsum("oc,bcl->bol", params["W3"][p], h) + params["B3"][p][None, :, None]
        h = jax.nn.relu(h)
        h = jnp.einsum("oc,bcl->bol", params["W4"][p], h) + params["B4"][p][None, :, None]
        outs.append(jnp.tanh(h))
    return jnp.concatenate(outs, axis=2)                   # (B, 3, P*L)


if __name__ == "__main__":
    # Small shapes consistent with the module: bottleneck = latent_vec_size + 2
    latent_caps_size = 16
    latent_vec_size = 62          # -> PointGenCon bottleneck = 64
    num_points = 128              # -> nb_primitives = 8 -> pblk=2, grid=(4,)
    batch = 2

    key = jax.random.PRNGKey(0)
    kx, kp, kg = jax.random.split(key, 3)
    x = jax.random.normal(kx, (batch, latent_caps_size, latent_vec_size),
                          jnp.float32)
    P = num_points // latent_caps_size
    params = init_params(kp, P, latent_vec_size + 2)
    rand_grid = jax.random.uniform(kg, (P, 2, batch * latent_caps_size),
                                   jnp.float32)

    out = caps_decoder_forward(x, params,
                               latent_caps_size=latent_caps_size,
                               num_points=num_points,
                               rand_grid=rand_grid)
    jax.block_until_ready(out)
    assert out.shape == (batch, 3, num_points), out.shape
    assert bool(jnp.all(jnp.isfinite(out)))
    assert bool(jnp.max(jnp.abs(out)) <= 1.0)       # tanh output range

    ref = _reference_forward(x, params, rand_grid,
                             latent_caps_size=latent_caps_size,
                             num_points=num_points)
    err = float(jnp.max(jnp.abs(out - ref)))
    assert err < 0.1, f"max abs error vs f32 reference: {err}"
    print("KERNEL_OK")
</pallas_src>

<mosaic_0001>
module attributes {stable_mosaic.version = 11 : i64} {
  func.func @_caps_decoder_kernel(%arg0: i32, %arg1: memref<62x32xbf16, #tpu.memory_space<vmem>>, %arg2: memref<2x2x32xf32, #tpu.memory_space<vmem>>, %arg3: memref<1x128x62xbf16, #tpu.memory_space<vmem>>, %arg4: memref<1x128x1xf32, #tpu.memory_space<vmem>>, %arg5: memref<2x64x2xf32, #tpu.memory_space<vmem>>, %arg6: memref<2x32x64xbf16, #tpu.memory_space<vmem>>, %arg7: memref<2x32x1xf32, #tpu.memory_space<vmem>>, %arg8: memref<2x16x32xbf16, #tpu.memory_space<vmem>>, %arg9: memref<2x16x1xf32, #tpu.memory_space<vmem>>, %arg10: memref<2x3x16xbf16, #tpu.memory_space<vmem>>, %arg11: memref<2x3x1xf32, #tpu.memory_space<vmem>>, %arg12: memref<1x6x32xf32, #tpu.memory_space<vmem>>) attributes {dimension_semantics = [#tpu.dimension_semantics<parallel>], iteration_bounds = array<i64: 4>, scalar_prefetch = 0 : i64, scratch_operands = 0 : i64, tpu.core_type = #tpu.core_type<tc>, window_params = [{pipeline_mode = #tpu.pipeline_mode<synchronous>, transform_indices = @transform_0, window_bounds = array<i64: 62, 32>}, {transform_indices = @transform_1, window_bounds = array<i64: 2, 2, 32>}, {transform_indices = @transform_2, window_bounds = array<i64: 1, 128, 62>}, {transform_indices = @transform_3, window_bounds = array<i64: 1, 128, 1>}, {transform_indices = @transform_4, window_bounds = array<i64: 2, 64, 2>}, {transform_indices = @transform_5, window_bounds = array<i64: 2, 32, 64>}, {transform_indices = @transform_6, window_bounds = array<i64: 2, 32, 1>}, {transform_indices = @transform_7, window_bounds = array<i64: 2, 16, 32>}, {transform_indices = @transform_8, window_bounds = array<i64: 2, 16, 1>}, {transform_indices = @transform_9, window_bounds = array<i64: 2, 3, 16>}, {transform_indices = @transform_10, window_bounds = array<i64: 2, 3, 1>}, {transform_indices = @transform_11, window_bounds = array<i64: 1, 6, 32>}]} {
    %c0 = arith.constant 0 : index
    %c0_0 = arith.constant 0 : index
    %0 = vector.load %arg1[%c0, %c0_0] : memref<62x32xbf16, #tpu.memory_space<vmem>>, vector<62x32xbf16>
    %c0_1 = arith.constant 0 : index
    %c0_2 = arith.constant 0 : index
    %c0_3 = arith.constant 0 : index
    %1 = vector.load %arg3[%c0_1, %c0_2, %c0_3] : memref<1x128x62xbf16, #tpu.memory_space<vmem>>, vector<1x128x62xbf16>
    %2 = vector.shape_cast %1 : vector<1x128x62xbf16> to vector<128x62xbf16>
    %cst = arith.constant dense<0.000000e+00> : vector<128x32xf32>
    %3 = tpu.matmul %2, %0, %cst {dimension_numbers = #tpu.dot_dimension_numbers<[1], [0], [0], [1], [0, 0, 1, 1], [], []>} : vector<128x62xbf16>, vector<62x32xbf16>, vector<128x32xf32> -> vector<128x32xf32>
    %c0_4 = arith.constant 0 : index
    %c0_5 = arith.constant 0 : index
    %c0_6 = arith.constant 0 : index
    %4 = vector.load %arg4[%c0_4, %c0_5, %c0_6] : memref<1x128x1xf32, #tpu.memory_space<vmem>>, vector<1x128x1xf32>
    %5 = vector.shape_cast %4 : vector<1x128x1xf32> to vector<128x1xf32>
    %6 = vector.broadcast %5 : vector<128x1xf32> to vector<128x32xf32>
    %7 = arith.addf %3, %6 : vector<128x32xf32>
    %c0_7 = arith.constant 0 : index
    %c0_8 = arith.constant 0 : index
    %c0_9 = arith.constant 0 : index
    %8 = vector.load %arg2[%c0_7, %c0_8, %c0_9] : memref<2x2x32xf32, #tpu.memory_space<vmem>>, vector<1x2x32xf32>
    %9 = vector.shape_cast %8 : vector<1x2x32xf32> to vector<2x32xf32>
    %c0_10 = arith.constant 0 : index
    %c0_11 = arith.constant 0 : index
    %c0_12 = arith.constant 0 : index
    %10 = vector.load %arg5[%c0_10, %c0_11, %c0_12] : memref<2x64x2xf32, #tpu.memory_space<vmem>>, vector<1x64x2xf32>
    %11 = vector.shape_cast %10 : vector<1x64x2xf32> to vector<64x2xf32>
    %12 = vector.extract_strided_slice %7 {offsets = [0, 0], sizes = [64, 32], strides = [1, 1]} : vector<128x32xf32> to vector<64x32xf32>
    %13 = vector.extract_strided_slice %11 {offsets = [0, 0], sizes = [64, 1], strides = [1, 1]} : vector<64x2xf32> to vector<64x1xf32>
    %14 = vector.extract_strided_slice %9 {offsets = [0, 0], sizes = [1, 32], strides = [1, 1]} : vector<2x32xf32> to vector<1x32xf32>
    %15 = vector.broadcast %13 : vector<64x1xf32> to vector<64x32xf32>
    %16 = vector.broadcast %14 : vector<1x32xf32> to vector<64x32xf32>
    %17 = arith.mulf %15, %16 : vector<64x32xf32>
    %18 = arith.addf %12, %17 : vector<64x32xf32>
    %19 = vector.extract_strided_slice %11 {offsets = [0, 1], sizes = [64, 1], strides = [1, 1]} : vector<64x2xf32> to vector<64x1xf32>
    %20 = vector.extract_strided_slice %9 {offsets = [1, 0], sizes = [1, 32], strides = [1, 1]} : vector<2x32xf32> to vector<1x32xf32>
    %21 = vector.broadcast %19 : vector<64x1xf32> to vector<64x32xf32>
    %22 = vector.broadcast %20 : vector<1x32xf32> to vector<64x32xf32>
    %23 = arith.mulf %21, %22 : vector<64x32xf32>
    %24 = arith.addf %18, %23 : vector<64x32xf32>
    %cst_13 = arith.constant 0.000000e+00 : f32
    %25 = vector.broadcast %cst_13 : f32 to vector<64x32xf32>
    %26 = arith.maximumf %24, %25 : vector<64x32xf32>
    %27 = arith.truncf %26 : vector<64x32xf32> to vector<64x32xbf16>
    %c0_14 = arith.constant 0 : index
    %c0_15 = arith.constant 0 : index
    %c0_16 = arith.constant 0 : index
    %28 = vector.load %arg6[%c0_14, %c0_15, %c0_16] : memref<2x32x64xbf16, #tpu.memory_space<vmem>>, vector<1x32x64xbf16>
    %29 = vector.shape_cast %28 : vector<1x32x64xbf16> to vector<32x64xbf16>
    %cst_17 = arith.constant dense<0.000000e+00> : vector<32x32xf32>
    %30 = tpu.matmul %29, %27, %cst_17 {dimension_numbers = #tpu.dot_dimension_numbers<[1], [0], [0], [1], [0, 0, 1, 1], [], []>} : vector<32x64xbf16>, vector<64x32xbf16>, vector<32x32xf32> -> vector<32x32xf32>
    %c0_18 = arith.constant 0 : index
    %c0_19 = arith.constant 0 : index
    %c0_20 = arith.constant 0 : index
    %31 = vector.load %arg7[%c0_18, %c0_19, %c0_20] : memref<2x32x1xf32, #tpu.memory_space<vmem>>, vector<1x32x1xf32>
    %32 = vector.shape_cast %31 : vector<1x32x1xf32> to vector<32x1xf32>
    %33 = vector.broadcast %32 : vector<32x1xf32> to vector<32x32xf32>
    %34 = arith.addf %30, %33 : vector<32x32xf32>
    %cst_21 = arith.constant 0.000000e+00 : f32
    %35 = vector.broadcast %cst_21 : f32 to vector<32x32xf32>
    %36 = arith.maximumf %34, %35 : vector<32x32xf32>
    %37 = arith.truncf %36 : vector<32x32xf32> to vector<32x32xbf16>
    %c0_22 = arith.constant 0 : index
    %c0_23 = arith.constant 0 : index
    %c0_24 = arith.constant 0 : index
    %38 = vector.load %arg8[%c0_22, %c0_23, %c0_24] : memref<2x16x32xbf16, #tpu.memory_space<vmem>>, vector<1x16x32xbf16>
    %39 = vector.shape_cast %38 : vector<1x16x32xbf16> to vector<16x32xbf16>
    %cst_25 = arith.constant dense<0.000000e+00> : vector<16x32xf32>
    %40 = tpu.matmul %39, %37, %cst_25 {dimension_numbers = #tpu.dot_dimension_numbers<[1], [0], [0], [1], [0, 0, 1, 1], [], []>} : vector<16x32xbf16>, vector<32x32xbf16>, vector<16x32xf32> -> vector<16x32xf32>
    %c0_26 = arith.constant 0 : index
    %c0_27 = arith.constant 0 : index
    %c0_28 = arith.constant 0 : index
    %41 = vector.load %arg9[%c0_26, %c0_27, %c0_28] : memref<2x16x1xf32, #tpu.memory_space<vmem>>, vector<1x16x1xf32>
    %42 = vector.shape_cast %41 : vector<1x16x1xf32> to vector<16x1xf32>
    %43 = vector.broadcast %42 : vector<16x1xf32> to vector<16x32xf32>
    %44 = arith.addf %40, %43 : vector<16x32xf32>
    %cst_29 = arith.constant 0.000000e+00 : f32
    %45 = vector.broadcast %cst_29 : f32 to vector<16x32xf32>
    %46 = arith.maximumf %44, %45 : vector<16x32xf32>
    %47 = arith.truncf %46 : vector<16x32xf32> to vector<16x32xbf16>
    %c0_30 = arith.constant 0 : index
    %c0_31 = arith.constant 0 : index
    %c0_32 = arith.constant 0 : index
    %48 = vector.load %arg10[%c0_30, %c0_31, %c0_32] : memref<2x3x16xbf16, #tpu.memory_space<vmem>>, vector<1x3x16xbf16>
    %49 = vector.shape_cast %48 : vector<1x3x16xbf16> to vector<3x16xbf16>
    %cst_33 = arith.constant dense<0.000000e+00> : vector<3x32xf32>
    %50 = tpu.matmul %49, %47, %cst_33 {dimension_numbers = #tpu.dot_dimension_numbers<[1], [0], [0], [1], [0, 0, 1, 1], [], []>} : vector<3x16xbf16>, vector<16x32xbf16>, vector<3x32xf32> -> vector<3x32xf32>
    %c0_34 = arith.constant 0 : index
    %c0_35 = arith.constant 0 : index
    %c0_36 = arith.constant 0 : index
    %51 = vector.load %arg11[%c0_34, %c0_35, %c0_36] : memref<2x3x1xf32, #tpu.memory_space<vmem>>, vector<1x3x1xf32>
    %52 = vector.shape_cast %51 : vector<1x3x1xf32> to vector<3x1xf32>
    %53 = vector.broadcast %52 : vector<3x1xf32> to vector<3x32xf32>
    %54 = arith.addf %50, %53 : vector<3x32xf32>
    %c1 = arith.constant 1 : index
    %c0_37 = arith.constant 0 : index
    %c0_38 = arith.constant 0 : index
    %55 = vector.load %arg2[%c1, %c0_37, %c0_38] : memref<2x2x32xf32, #tpu.memory_space<vmem>>, vector<1x2x32xf32>
    %56 = vector.shape_cast %55 : vector<1x2x32xf32> to vector<2x32xf32>
    %c1_39 = arith.constant 1 : index
    %c0_40 = arith.constant 0 : index
    %c0_41 = arith.constant 0 : index
    %57 = vector.load %arg5[%c1_39, %c0_40, %c0_41] : memref<2x64x2xf32, #tpu.memory_space<vmem>>, vector<1x64x2xf32>
    %58 = vector.shape_cast %57 : vector<1x64x2xf32> to vector<64x2xf32>
    %59 = vector.extract_strided_slice %7 {offsets = [64, 0], sizes = [64, 32], strides = [1, 1]} : vector<128x32xf32> to vector<64x32xf32>
    %60 = vector.extract_strided_slice %58 {offsets = [0, 0], sizes = [64, 1], strides = [1, 1]} : vector<64x2xf32> to vector<64x1xf32>
    %61 = vector.extract_strided_slice %56 {offsets = [0, 0], sizes = [1, 32], strides = [1, 1]} : vector<2x32xf32> to vector<1x32xf32>
    %62 = vector.broadcast %60 : vector<64x1xf32> to vector<64x32xf32>
    %63 = vector.broadcast %61 : vector<1x32xf32> to vector<64x32xf32>
    %64 = arith.mulf %62, %63 : vector<64x32xf32>
    %65 = arith.addf %59, %64 : vector<64x32xf32>
    %66 = vector.extract_strided_slice %58 {offsets = [0, 1], sizes = [64, 1], strides = [1, 1]} : vector<64x2xf32> to vector<64x1xf32>
    %67 = vector.extract_strided_slice %56 {offsets = [1, 0], sizes = [1, 32], strides = [1, 1]} : vector<2x32xf32> to vector<1x32xf32>
    %68 = vector.broadcast %66 : vector<64x1xf32> to vector<64x32xf32>
    %69 = vector.broadcast %67 : vector<1x32xf32> to vector<64x32xf32>
    %70 = arith.mulf %68, %69 : vector<64x32xf32>
    %71 = arith.addf %65, %70 : vector<64x32xf32>
    %cst_42 = arith.constant 0.000000e+00 : f32
    %72 = vector.broadcast %cst_42 : f32 to vector<64x32xf32>
    %73 = arith.maximumf %71, %72 : vector<64x32xf32>
    %74 = arith.truncf %73 : vector<64x32xf32> to vector<64x32xbf16>
    %c1_43 = arith.constant 1 : index
    %c0_44 = arith.constant 0 : index
    %c0_45 = arith.constant 0 : index
    %75 = vector.load %arg6[%c1_43, %c0_44, %c0_45] : memref<2x32x64xbf16, #tpu.memory_space<vmem>>, vector<1x32x64xbf16>
    %76 = vector.shape_cast %75 : vector<1x32x64xbf16> to vector<32x64xbf16>
    %cst_46 = arith.constant dense<0.000000e+00> : vector<32x32xf32>
    %77 = tpu.matmul %76, %74, %cst_46 {dimension_numbers = #tpu.dot_dimension_numbers<[1], [0], [0], [1], [0, 0, 1, 1], [], []>} : vector<32x64xbf16>, vector<64x32xbf16>, vector<32x32xf32> -> vector<32x32xf32>
    %c1_47 = arith.constant 1 : index
    %c0_48 = arith.constant 0 : index
    %c0_49 = arith.constant 0 : index
    %78 = vector.load %arg7[%c1_47, %c0_48, %c0_49] : memref<2x32x1xf32, #tpu.memory_space<vmem>>, vector<1x32x1xf32>
    %79 = vector.shape_cast %78 : vector<1x32x1xf32> to vector<32x1xf32>
    %80 = vector.broadcast %79 : vector<32x1xf32> to vector<32x32xf32>
    %81 = arith.addf %77, %80 : vector<32x32xf32>
    %cst_50 = arith.constant 0.000000e+00 : f32
    %82 = vector.broadcast %cst_50 : f32 to vector<32x32xf32>
    %83 = arith.maximumf %81, %82 : vector<32x32xf32>
    %84 = arith.truncf %83 : vector<32x32xf32> to vector<32x32xbf16>
    %c1_51 = arith.constant 1 : index
    %c0_52 = arith.constant 0 : index
    %c0_53 = arith.constant 0 : index
    %85 = vector.load %arg8[%c1_51, %c0_52, %c0_53] : memref<2x16x32xbf16, #tpu.memory_space<vmem>>, vector<1x16x32xbf16>
    %86 = vector.shape_cast %85 : vector<1x16x32xbf16> to vector<16x32xbf16>
    %cst_54 = arith.constant dense<0.000000e+00> : vector<16x32xf32>
    %87 = tpu.matmul %86, %84, %cst_54 {dimension_numbers = #tpu.dot_dimension_numbers<[1], [0], [0], [1], [0, 0, 1, 1], [], []>} : vector<16x32xbf16>, vector<32x32xbf16>, vector<16x32xf32> -> vector<16x32xf32>
    %c1_55 = arith.constant 1 : index
    %c0_56 = arith.constant 0 : index
    %c0_57 = arith.constant 0 : index
    %88 = vector.load %arg9[%c1_55, %c0_56, %c0_57] : memref<2x16x1xf32, #tpu.memory_space<vmem>>, vector<1x16x1xf32>
    %89 = vector.shape_cast %88 : vector<1x16x1xf32> to vector<16x1xf32>
    %90 = vector.broadcast %89 : vector<16x1xf32> to vector<16x32xf32>
    %91 = arith.addf %87, %90 : vector<16x32xf32>
    %cst_58 = arith.constant 0.000000e+00 : f32
    %92 = vector.broadcast %cst_58 : f32 to vector<16x32xf32>
    %93 = arith.maximumf %91, %92 : vector<16x32xf32>
    %94 = arith.truncf %93 : vector<16x32xf32> to vector<16x32xbf16>
    %c1_59 = arith.constant 1 : index
    %c0_60 = arith.constant 0 : index
    %c0_61 = arith.constant 0 : index
    %95 = vector.load %arg10[%c1_59, %c0_60, %c0_61] : memref<2x3x16xbf16, #tpu.memory_space<vmem>>, vector<1x3x16xbf16>
    %96 = vector.shape_cast %95 : vector<1x3x16xbf16> to vector<3x16xbf16>
    %cst_62 = arith.constant dense<0.000000e+00> : vector<3x32xf32>
    %97 = tpu.matmul %96, %94, %cst_62 {dimension_numbers = #tpu.dot_dimension_numbers<[1], [0], [0], [1], [0, 0, 1, 1], [], []>} : vector<3x16xbf16>, vector<16x32xbf16>, vector<3x32xf32> -> vector<3x32xf32>
    %c1_63 = arith.constant 1 : index
    %c0_64 = arith.constant 0 : index
    %c0_65 = arith.constant 0 : index
    %98 = vector.load %arg11[%c1_63, %c0_64, %c0_65] : memref<2x3x1xf32, #tpu.memory_space<vmem>>, vector<1x3x1xf32>
    %99 = vector.shape_cast %98 : vector<1x3x1xf32> to vector<3x1xf32>
    %100 = vector.broadcast %99 : vector<3x1xf32> to vector<3x32xf32>
    %101 = arith.addf %97, %100 : vector<3x32xf32>
    %102 = tpu.concatenate %54, %101 in 0 : vector<3x32xf32>, vector<3x32xf32> -> vector<6x32xf32>
    %103 = math.tanh %102 : vector<6x32xf32>
    %c0_66 = arith.constant 0 : index
    %c0_67 = arith.constant 0 : index
    %c0_68 = arith.constant 0 : index
    %104 = vector.load %arg12[%c0_66, %c0_67, %c0_68] : memref<1x6x32xf32, #tpu.memory_space<vmem>>, vector<1x6x32xf32>
    %105 = vector.shape_cast %104 : vector<1x6x32xf32> to vector<6x32xf32>
    %106 = vector.shape_cast %103 : vector<6x32xf32> to vector<1x6x32xf32>
    tpu.vector_store %arg12[%c0_66, %c0_67, %c0_68], %106 {strides = array<i32>} : memref<1x6x32xf32, #tpu.memory_space<vmem>>, vector<1x6x32xf32>,
    return
  }
  func.func @transform_0(%arg0: i32) -> (i32, i32) {
    %c0_i32 = arith.constant 0 : i32
    %c0_i32_0 = arith.constant 0 : i32
    %c0_i32_1 = arith.constant 0 : i32
    return %c0_i32, %c0_i32_0 : i32, i32
  }
  func.func @transform_1(%arg0: i32) -> (i32, i32, i32) {
    %c0_i32 = arith.constant 0 : i32
    %c0_i32_0 = arith.constant 0 : i32
    %c0_i32_1 = arith.constant 0 : i32
    return %arg0, %c0_i32, %c0_i32_0 : i32, i32, i32
  }
  func.func @transform_2(%arg0: i32) -> (i32, i32, i32) {
    %c0_i32 = arith.constant 0 : i32
    %c0_i32_0 = arith.constant 0 : i32
    %c0_i32_1 = arith.constant 0 : i32
    return %arg0, %c0_i32, %c0_i32_0 : i32, i32, i32
  }
  func.func @transform_3(%arg0: i32) -> (i32, i32, i32) {
    %c0_i32 = arith.constant 0 : i32
    %c0_i32_0 = arith.constant 0 : i32
    %c0_i32_1 = arith.constant 0 : i32
    return %arg0, %c0_i32, %c0_i32_0 : i32, i32, i32
  }
  func.func @transform_4(%arg0: i32) -> (i32, i32, i32) {
    %c0_i32 = arith.constant 0 : i32
    %c0_i32_0 = arith.constant 0 : i32
    %c0_i32_1 = arith.constant 0 : i32
    return %arg0, %c0_i32, %c0_i32_0 : i32, i32, i32
  }
  func.func @transform_5(%arg0: i32) -> (i32, i32, i32) {
    %c0_i32 = arith.constant 0 : i32
    %c0_i32_0 = arith.constant 0 : i32
    %c0_i32_1 = arith.constant 0 : i32
    return %arg0, %c0_i32, %c0_i32_0 : i32, i32, i32
  }
  func.func @transform_6(%arg0: i32) -> (i32, i32, i32) {
    %c0_i32 = arith.constant 0 : i32
    %c0_i32_0 = arith.constant 0 : i32
    %c0_i32_1 = arith.constant 0 : i32
    return %arg0, %c0_i32, %c0_i32_0 : i32, i32, i32
  }
  func.func @transform_7(%arg0: i32) -> (i32, i32, i32) {
    %c0_i32 = arith.constant 0 : i32
    %c0_i32_0 = arith.constant 0 : i32
    %c0_i32_1 = arith.constant 0 : i32
    return %arg0, %c0_i32, %c0_i32_0 : i32, i32, i32
  }
  func.func @transform_8(%arg0: i32) -> (i32, i32, i32) {
    %c0_i32 = arith.constant 0 : i32
    %c0_i32_0 = arith.constant 0 : i32
    %c0_i32_1 = arith.constant 0 : i32
    return %arg0, %c0_i32, %c0_i32_0 : i32, i32, i32
  }
  func.func @transform_9(%arg0: i32) -> (i32, i32, i32) {
    %c0_i32 = arith.constant 0 : i32
    %c0_i32_0 = arith.constant 0 : i32
    %c0_i32_1 = arith.constant 0 : i32
    return %arg0, %c0_i32, %c0_i32_0 : i32, i32, i32
  }
  func.func @transform_10(%arg0: i32) -> (i32, i32, i32) {
    %c0_i32 = arith.constant 0 : i32
    %c0_i32_0 = arith.constant 0 : i32
    %c0_i32_1 = arith.constant 0 : i32
    return %arg0, %c0_i32, %c0_i32_0 : i32, i32, i32
  }
  func.func @transform_11(%arg0: i32) -> (i32, i32, i32) {
    %c0_i32 = arith.constant 0 : i32
    %c0_i32_0 = arith.constant 0 : i32
    %c0_i32_1 = arith.constant 0 : i32
    return %arg0, %c0_i32, %c0_i32_0 : i32, i32, i32
  }
}

</mosaic_0001>

<bundles_post_ra>
// kernel: tpu_custom_call.1
= control target key start
LH: loop header
LB: loop body
LE: loop exit
PB: predicated region body
PF: predicated region fallthrough
CT: control target
= control target key end

     0   :  { %s2116_s17 = smov 0   ;;  %s2393_s0 = inlined_call_operand.vmem [shape: bf16[62,32], index: 0, kind: input, shape index: {}]   ;;  %s2394_s1 = inlined_call_operand.vmem [shape: f32[8,2,32], index: 1, kind: input, shape index: {}]   ;;  %s2395_s2 = inlined_call_operand.vmem [shape: bf16[4,128,62], index: 2, kind: input, shape index: {}]   ;;  %s2396_s3 = inlined_call_operand.vmem [shape: f32[4,128,1], index: 3, kind: input, shape index: {}]   ;;  %s2397_s4 = inlined_call_operand.vmem [shape: f32[8,64,2], index: 4, kind: input, shape index: {}]   ;;  %s2398_s5 = inlined_call_operand.vmem [shape: bf16[8,32,64], index: 5, kind: input, shape index: {}]   ;;  %s2399_s6 = inlined_call_operand.vmem [shape: f32[8,32,1], index: 6, kind: input, shape index: {}]   ;;  %s2400_s7 = inlined_call_operand.vmem [shape: bf16[8,16,32], index: 7, kind: input, shape index: {}]   ;;  %s2401_s8 = inlined_call_operand.vmem [shape: f32[8,16,1], index: 8, kind: input, shape index: {}]   ;;  %s2402_s9 = inlined_call_operand.vmem [shape: bf16[8,3,16], index: 9, kind: input, shape index: {}]   ;;  %s2403_s10 = inlined_call_operand.vmem [shape: f32[8,3,1], index: 10, kind: input, shape index: {}]   ;;  %s2404_s11 = inlined_call_operand.vmem [shape: f32[4,6,32], index: 11, kind: output, shape index: {}]  }
   0x1 LB: > { %s1782_s18 = sadd.s32 4294967295, %s2050_s17   ;;  %p1786_p0 = scmp.ge.s32.totalorder %s2050_s17, 1  ;;  %s2050_s17 = sphi %s2116_s17, %s21_s17  }
   0x2   : > { %p440_p1 = scmp.lt.s32.totalorder %s2050_s17, 5 }
   0x4   : > { %p441_p2 = pnand %p1786_p0, %p440_p1 }
   0x5   : > { %p535_p3 = scmp.lt.s32.totalorder (!%p441_p2), %s1782_s18, 3  ;;  %s1787_s25 = sshll.u32 (!%p441_p2), %s1782_s18, 1 }
   0x6   : > { %444 = sbr.rel (%p441_p2) target bundleno = 1102 (0x44e), region = 64  ;;  %p530_p4 = scmp.lt.s32.totalorder (!%p441_p2), %s1787_s25, 7 }
   0xb   : > { %v2024_v0 = vld [vmem:[%s2393_s0 + $0x18] sm:$0x7f]   ;;  %vm805_vm0 = vcmask 1046528   ;;  %v2025_v1 = vld [vmem:[%s2393_s0 + $0x10] sm:$0xff]   ;;  %v2026_v3 = vld [vmem:[%s2393_s0 + $0x8] sm:$0xff]   ;;  %s2406_s18 = smov (!%p535_p3, %s1782_s18), 3 }
   0xc   : > { %1989 = vmatprep.subr.msk.bf16.mxu0 %vm805_vm0, %v2024_v0  ;;  %v807_v2 = vsel %vm805_vm0, %v2024_v0, 0  ;;  %v2052_v4 = vmov 0   ;;  %s1872_s26 = sshll.u32 %s2406_s18, 6  ;;  %v2027_v5 = vld [vmem:[%s2393_s0] sm:$0xff]   ;;  %vm780_vm1 = vcmask 506880   ;;  %s2408_s25 = smov (!%p530_p4, %s1787_s25), 7 }
   0xd   : > { %1914 = vmatpush3.bf16.msra.mxu0 %v807_v2  ;;  %2003 = vset.pattern.permute.xlu1 %v2052_v4  ;;  %s2144_s12 = scalar_lea.vmem %s2395_s2, %s1872_s26  ;;  %s1873_s13 = sshll.u32 %s2406_s18, 7  ;;  %v2053_v15 = vmov 1   ;;  %vm1077_vm2 = vcmask 523264   ;;  %vm2055_vm3 = vmmov 0   ;;  %vm1158_vm4 = vcmask 261120  }
   0xe   : > { %1915 = vmatprep.subr.bf16.mxu0 %v2025_v1  ;;  %2002 = vset.pattern.permute.xlu0 %v2052_v4  ;;  %v2028_v6 = vld [vmem:[%s2144_s12] sm:$0xff]   ;;  %s1874_s14 = sshll.u32 %s2408_s25, 6  ;;  %s2161_s22 = scalar_lea.vmem %s2396_s3, %s1873_s13  ;;  %v2029_v8 = vld [vmem:[%s2144_s12 + $0x8] sm:$0xff]   ;;  %v2030_v10 = vld [vmem:[%s2144_s12 + $0x10] sm:$0xff]   ;;  %vm1213_vm5 = vcmask 130048   ;;  %vm1616_vm6 = vcmask 1042432  }
   0xf   : > { %1921 = vmatprep.mubr.msk.bf16.mxu0 %vm780_vm1, %v2028_v6  ;;  %s2155_s19 = scalar_lea.vmem %s2397_s4, %s1874_s14  ;;  %v627_v9 = vld [vmem:[%s2161_s22 + $0x30] sm:$0xff]  ;;  %v628_v12 = vld [vmem:[%s2161_s22 + $0x38] sm:$0xff]  ;;  %v626_v13 = vld [vmem:[%s2161_s22 + $0x28] sm:$0xff]  ;;  %s1876_s23 = sshll.u32 %s2408_s25, 5  ;;  %vm1619_vm7 = vcmask 259072  }
  0x10   : > { %v913_v7 = vld [vmem:[%s2155_s19 + $0x30] sm:$0xff]  ;;  %v914_v11 = vld [vmem:[%s2155_s19 + $0x38] sm:$0xff]  ;;  %669 = vperm.xlu0 %2002, %v627_v9   ;;  %v2032_v17 = vld [vmem:[%s2144_s12 + $0x20] sm:$0xff]   ;;  %s2217_s27 = scalar_lea.vmem %s2399_s6, %s1876_s23  ;;  %s1875_s28 = sshll.u32 %s2408_s25, 4 }
  0x11   : > { %1916 = vmatpush3.bf16.msra.mxu0 %v2025_v1  ;;  %947 = vperm.xlu1 %2003, %v913_v7   ;;  %v2031_v14 = vld [vmem:[%s2144_s12 + $0x18] sm:$0xff]   ;;  %v625_v18 = vld [vmem:[%s2161_s22 + $0x20] sm:$0xff]  ;;  %v622_v19 = vld [vmem:[%s2161_s22 + $0x8] sm:$0xff]  ;;  %s1788_s13 = sshll.u32 %s2408_s25, 1  ;;  %s578_s26 = scalar_lea.vmem %s2401_s8, %s1875_s28 }
  0x12   : > { %1917 = vmatprep.subr.bf16.mxu0 %v2026_v3  ;;  %v624_v16 = vld [vmem:[%s2161_s22 + $0x18] sm:$0xff]  ;;  %v911_v20 = vld [vmem:[%s2155_s19 + $0x20] sm:$0xff]  ;;  %v2033_v21 = vld [vmem:[%s2144_s12 + $0x28] sm:$0xff]   ;;  %s2260_s16 = scalar_lea.vmem %s2394_s1, %s1788_s13  ;;  %s1811_s29 = sshll.u32 %s2408_s25, 2 }
  0x13   : > { %v2034_v22 = vld [vmem:[%s2144_s12 + $0x30] sm:$0xff]   ;;  %v912_v23 = vld [vmem:[%s2155_s19 + $0x28] sm:$0xff]  ;;  %v2035_v24 = vld [vmem:[%s2144_s12 + $0x38] sm:$0xff]   ;;  %s2231_s12 = scalar_lea.vmem %s2398_s5, %s1875_s28  ;;  %s590_s14 = scalar_lea.vmem %s2403_s10, %s1811_s29 }
  0x14   : > { %674 = vperm.xlu0 %2002, %v628_v12   ;;  %v623_v25 = vld [vmem:[%s2161_s22 + $0x10] sm:$0xff]  ;;  %v907_v27 = vld [vmem:[%s2155_s19] sm:$0xff]  ;;  %v910_v28 = vld [vmem:[%s2155_s19 + $0x18] sm:$0xff]  ;;  %s2371_s15 = scalar_lea.vmem %s2402_s9, %s1788_s13 }
  0x15   : > { %1918 = vmatpush3.bf16.msra.mxu0 %v2026_v3  ;;  %952 = vperm.xlu1 %2003, %v914_v11   ;;  %v909_v26 = vld [vmem:[%s2155_s19 + $0x10] sm:$0xff]  ;;  %v621_v29 = vld [vmem:[%s2161_s22] sm:$0xff]  ;;  %v908_v30 = vld [vmem:[%s2155_s19 + $0x8] sm:$0xff] }
  0x16   : > { %1919 = vmatprep.subr.bf16.mxu0 %v2027_v5  ;;  %v635_v31 = vld [vmem:[%s2161_s22 + $0x70] sm:$0xff]  ;;  %v1848_v33 = vld [vmem:[%s2155_s19 + $0x78] sm:$0xff]  ;;  %v633_v34 = vld [vmem:[%s2161_s22 + $0x60] sm:$0xff] }
  0x17   : > { %v1847_v32 = vld [vmem:[%s2155_s19 + $0x70] sm:$0xff]  ;;  %v636_v35 = vld [vmem:[%s2161_s22 + $0x78] sm:$0xff]  ;;  %v1845_v36 = vld [vmem:[%s2155_s19 + $0x60] sm:$0xff] }
  0x18   : > { %664 = vperm.xlu0 %2002, %v626_v13   ;;  %v634_v37 = vld [vmem:[%s2161_s22 + $0x68] sm:$0xff]  ;;  %v632_v39 = vld [vmem:[%s2161_s22 + $0x58] sm:$0xff]  ;;  %v1045_v40 = vld [vmem:[%s2217_s27 + $0x10] sm:$0xff] }
  0x19   : > { %1920 = vmatpush3.bf16.msra.mxu0 %v2027_v5  ;;  %2004 = vset.pattern.permute.xlu1 %v2053_v15  ;;  %v1846_v38 = vld [vmem:[%s2155_s19 + $0x68] sm:$0xff]  ;;  %v631_v41 = vld [vmem:[%s2161_s22 + $0x50] sm:$0xff]  ;;  %v1043_v44 = vld [vmem:[%s2217_s27] sm:$0xff] }
  0x1a   : > { %1004 = vperm.xlu1 %2004, %v914_v11   ;;  %v630_v42 = vld [vmem:[%s2161_s22 + $0x48] sm:$0xff]  ;;  %v1843_v43 = vld [vmem:[%s2155_s19 + $0x50] sm:$0xff]  ;;  %v2036_v45 = vld [vmem:[%s2231_s12] sm:$0xff]  }
  0x1b   : > { %1945 = vmatprep.mubr.msk.bf16.mxu1 %vm1077_vm2, %v2036_v45  ;;  %v1844_v46 = vld [vmem:[%s2155_s19 + $0x58] sm:$0xff]  ;;  %v629_v49 = vld [vmem:[%s2161_s22 + $0x40] sm:$0xff]  ;;  %v1842_v52 = vld [vmem:[%s2155_s19 + $0x48] sm:$0xff] }
  0x1c   : > { %1922 = vmatmul.mubr.msk.bf16.vlgmr.msra.gmra.mxu0 %vm780_vm1, %v2029_v8  ;;  %654 = vperm.xlu0 %2002, %v624_v16   ;;  %v1046_v47 = vld [vmem:[%s2217_s27 + $0x18] sm:$0xff]  ;;  %v1841_v50 = vld [vmem:[%s2155_s19 + $0x40] sm:$0xff]  ;;  %v1044_v54 = vld [vmem:[%s2217_s27 + $0x8] sm:$0xff]  ;;  %s1877_s19 = sshll.u32 %s2408_s25, 3  ;;  %s1812_s25 = sshll.u32 %s2406_s18, 3 }
  0x1d   : > { %1925 = vmatprep.mubr.msk.bf16.mxu0 %vm780_vm1, %v2030_v10  ;;  %v955_v10 = vlaneseq  ;;  %v906_v16 = vld [vmem:[%s2260_s16] sm:$0x3]  ;;  %s2342_s22 = scalar_lea.vmem %s2400_s7, %s1877_s19  ;;  %s595_s19 = scalar_lea.vmem %s2404_s11, %s1812_s25 }
  0x1e   : > { %2005 = vset.pattern.permute.xlu1 %v2052_v4 }
  0x1f   : > { %659 = vperm.xlu1 %2005, %v625_v18   ;;  %v2253_v11 = vshrl.u32 %v955_v10, 7 }
  0x20   : > { %644 = vperm.xlu0 %2002, %v622_v19  }
  0x23   : > { %937 = vperm.xlu1 %2005, %v911_v20  }
  0x24   : > { %1926 = vmatmul.mubr.msk.bf16.gmra.mxu0 %vm780_vm1, %v2031_v14  ;;  %2010 = vset.pattern.permute.xlu0 %v2053_v15 }
  0x25   : > { %1929 = vmatprep.mubr.msk.bf16.mxu0 %vm780_vm1, %v2032_v17  ;;  %1000 = vperm.xlu0 %2010, %v913_v7  }
  0x27   : > { %942 = vperm.xlu1 %2005, %v912_v23  }
  0x29   : > { %992 = vperm.xlu0 %2010, %v911_v20   ;;  %v1009_v20 = vsub.s32 1, %v2253_v11 }
  0x2b   : > { %2006 = vset.pattern.permute.xlu1 %v2053_v15 }
  0x2c   : > { %1930 = vmatmul.mubr.msk.bf16.gmra.mxu0 %vm780_vm1, %v2033_v21  ;;  %996 = vperm.xlu1 %2006, %v912_v23  }
  0x2d   : > { %1933 = vmatprep.mubr.msk.bf16.mxu0 %vm780_vm1, %v2034_v22  ;;  %984 = vperm.xlu0 %2010, %v909_v26  }
  0x30   : > { %2007 = vset.pattern.permute.xlu1 %v2052_v4 }
  0x31   : > { %649 = vperm.xlu1 %2007, %v623_v25   ;;  %976 = vperm.xlu0 %2010, %v907_v27  }
  0x34   : > { %1934 = vmatmul.mubr.msk.bf16.gmra.mxu0 %vm780_vm1, %v2035_v24  ;;  %v1010_v24 = vrot.slane %v906_v16, %v1009_v20 }
  0x35   : > { %927 = vperm.xlu1 %2007, %v909_v26   ;;  %2013 = vset.pattern.permute.xlu0 %v2052_v4 }
  0x36   : > { %714 = vperm.xlu0 %2013, %v636_v35  }
  0x39   : > { %932 = vperm.xlu1 %2007, %v910_v28  }
  0x3a   : > { %704 = vperm.xlu0 %2013, %v634_v37  }
  0x3d   : > { %2008 = vset.pattern.permute.xlu1 %v2053_v15 }
  0x3e   : > { %988 = vperm.xlu1 %2008, %v910_v28   ;;  %694 = vperm.xlu0 %2013, %v632_v39  }
  0x42   : > { %2009 = vset.pattern.permute.xlu1 %v2052_v4  ;;  %1059 = vperm.xlu0 %2013, %v1045_v40  }
  0x43   : > { %639 = vperm.xlu1 %2009, %v621_v29  }
  0x46   : > { %684 = vperm.xlu0 %2013, %v630_v42  }
  0x47   : > { %917 = vperm.xlu1 %2009, %v907_v27  }
  0x4a   : > { %1049 = vperm.xlu0 %2013, %v1043_v44  }
  0x4b   : > { %922 = vperm.xlu1 %2009, %v908_v30  }
  0x4e   : > { %2020 = vset.pattern.permute.xlu0 %v2053_v15 }
  0x4f   : > { %2011 = vset.pattern.permute.xlu1 %v2053_v15  ;;  %1353 = vperm.xlu0 %2020, %v1847_v32  }
  0x50   : > { %980 = vperm.xlu1 %2011, %v908_v30  }
  0x53   : > { %1345 = vperm.xlu0 %2020, %v1845_v36  }
  0x54   : > { %2012 = vset.pattern.permute.xlu1 %v2052_v4 }
  0x55   : > { %709 = vperm.xlu1 %2012, %v635_v31  }
  0x57   : > { %1337 = vperm.xlu0 %2020, %v1843_v43  }
  0x59   : > { %1300 = vperm.xlu1 %2012, %v1847_v32  }
  0x5b   : > { %1329 = vperm.xlu0 %2020, %v1841_v50  }
  0x5d   : > { %1305 = vperm.xlu1 %2012, %v1848_v33  }
  0x5f   : > { %2023 = vset.pattern.permute.xlu0 %v2052_v4 }
  0x61   : > { %2014 = vset.pattern.permute.xlu1 %v2053_v15 }
  0x62   : > { %1357 = vperm.xlu1 %2014, %v1848_v33  }
  0x66   : > { %2015 = vset.pattern.permute.xlu1 %v2052_v4 }
  0x67   : > { %699 = vperm.xlu1 %2015, %v633_v34  }
  0x6b   : > { %1290 = vperm.xlu1 %2015, %v1845_v36  }
  0x6f   : > { %1295 = vperm.xlu1 %2015, %v1846_v38  }
  0x73   : > { %2016 = vset.pattern.permute.xlu1 %v2053_v15 }
  0x74   : > { %1349 = vperm.xlu1 %2016, %v1846_v38  }
  0x78   : > { %2017 = vset.pattern.permute.xlu1 %v2052_v4 }
  0x79   : > { %689 = vperm.xlu1 %2017, %v631_v41  }
  0x7d   : > { %1280 = vperm.xlu1 %2017, %v1843_v43  }
  0x81   : > { %1285 = vperm.xlu1 %2017, %v1844_v46  }
  0x85   : > { %1064 = vperm.xlu1 %2017, %v1046_v47  }
  0x89   : > { %2018 = vset.pattern.permute.xlu1 %v2053_v15 }
  0x8a   : > { %1341 = vperm.xlu1 %2018, %v1844_v46  }
  0x8b   : > { %v670_v60 = vpop.permute.xlu0 %669 }
  0x8c   : > { %v948_v48 = vpop.permute.xlu1 %947 }
  0x8e   : > { %2019 = vset.pattern.permute.xlu1 %v2052_v4 }
  0x8f   : > { %679 = vperm.xlu1 %2019, %v629_v49   ;;  %v675_v62 = vpop.permute.xlu0 %674 }
  0x90   : > { %v953_v51 = vpop.permute.xlu1 %952 }
  0x93   : > { %1270 = vperm.xlu1 %2019, %v1841_v50   ;;  %v665_v1 = vpop.permute.xlu0 %664 }
  0x95   : > { %v1005_v53 = vpop.permute.xlu1 %1004 }
  0x96   : > { %v1018_v37 = vmul.f32 %v1010_v24, %v1005_v53 }
  0x97   : > { %1275 = vperm.xlu1 %2019, %v1842_v52   ;;  %v655_v3 = vpop.permute.xlu0 %654 }
  0x9a   : > { %v660_v55 = vpop.permute.xlu1 %659 }
  0x9b   : > { %1054 = vperm.xlu1 %2019, %v1044_v54   ;;  %v645_v6 = vpop.permute.xlu0 %644 }
  0x9e   : > { %v938_v56 = vpop.permute.xlu1 %937 }
  0x9f   : > { %2021 = vset.pattern.permute.xlu1 %v2053_v15  ;;  %v957_v15 = vsub.s32 0, %v2253_v11 }
  0xa0   : > { %1333 = vperm.xlu1 %2021, %v1842_v52   ;;  %v1001_v8 = vpop.permute.xlu0 %1000 }
  0xa1   : > { %v958_v22 = vrot.slane %v906_v16, %v957_v15  ;;  %v1017_v33 = vmul.f32 %v1010_v24, %v1001_v8 }
  0xa2   : > { %v943_v57 = vpop.permute.xlu1 %942 }
  0xa3   : > { %v965_v27 = vmul.f32 %v958_v22, %v948_v48  ;;  %v963_v32 = vmul.f32 %v958_v22, %v938_v56  ;;  %v966_v36 = vmul.f32 %v958_v22, %v953_v51  ;;  %v964_v41 = vmul.f32 %v958_v22, %v943_v57 }
  0xa4   : > { %2022 = vset.pattern.permute.xlu1 %v2052_v4  ;;  %v993_v12 = vpop.permute.xlu0 %992 }
  0xa5   : > { %v1015_v42 = vmul.f32 %v1010_v24, %v993_v12 }
  0xa7   : > { %v2248_v58 = vpop.permute.xlu1 %996 }
  0xa8   : > { %v985_v18 = vpop.permute.xlu0 %984  ;;  %v1016_v53 = vmul.f32 %v1010_v24, %v2248_v58 }
  0xac   : > { %v650_v59 = vpop.permute.xlu1 %649  ;;  %v977_v28 = vpop.permute.xlu0 %976 }
  0xb0   : > { %v928_v61 = vpop.permute.xlu1 %927 }
  0xb1   : > { %v715_v46 = vpop.permute.xlu0 %714  ;;  %v961_v47 = vmul.f32 %v958_v22, %v928_v61 }
  0xb4   : > { %v933_v63 = vpop.permute.xlu1 %932 }
  0xb5   : > { %v962_v38 = vmul.f32 %v958_v22, %v933_v63 }
  0xb9   : > { %v989_v0 = vpop.permute.xlu1 %988 }
  0xba   : > { %v1014_v48 = vmul.f32 %v1010_v24, %v989_v0  ;;  %v705_v0 = vpop.permute.xlu0 %704 }
  0xbe   : > { %v640_v2 = vpop.permute.xlu1 %639 }
  0xc2   : > { %v918_v5 = vpop.permute.xlu1 %917 }
  0xc3   : > { %v959_v57 = vmul.f32 %v958_v22, %v918_v5 }
  0xc6   : > { %v923_v7 = vpop.permute.xlu1 %922 }
  0xc7   : > { %v960_v50 = vmul.f32 %v958_v22, %v923_v7 }
  0xcb   : > { %v981_v9 = vpop.permute.xlu1 %980 }
  0xcc   : > { %v1012_v7 = vmul.f32 %v1010_v24, %v981_v9 }
  0xd0   : > { %v2250_v4 = vpop.permute.xlu1 %709 }
  0xd4   : > { %v2262_v13 = vpop.permute.xlu1 %1300 }
  0xd8   : > { %v2266_v19 = vpop.permute.xlu1 %1305 }
  0xdc   : > { %v1923_v14 = vpop.f32.mrf.mxu0 }
  0xdd   : > { %v2273_v26 = vpop.permute.xlu1 %1357  ;;  %v852_v39 = vadd.f32 %v1923_v14, %v650_v59 }
  0xde   : > { %v843_v17 = vpop.f32.mrf.mxu0 }
  0xdf   : > { %v969_v59 = vadd.f32 %v961_v47, %v852_v39 }
  0xe0   : > { %v1924_v21 = vpop.f32.mrf.mxu0 }
  0xe1   : > { %v855_v30 = vadd.f32 %v1924_v21, %v655_v3 }
  0xe2   : > { %v846_v23 = vpop.f32.mrf.mxu0  ;;  %v2275_v45 = vpop.permute.xlu1 %699 }
  0xe3   : > { %v970_v49 = vadd.f32 %v962_v38, %v855_v30  ;;  %v847_v54 = vadd.f32 %v846_v23, %v645_v6 }
  0xe4   : > { %v1927_v25 = vpop.f32.mrf.mxu0 }
  0xe5   : > { %v868_v29 = vadd.f32 %v1927_v25, %v670_v60  ;;  %v1013_v60 = vmul.f32 %v1010_v24, %v985_v18  ;;  %v1022_v12 = vadd.f32 %v1014_v48, %v970_v49  ;;  %v968_v6 = vadd.f32 %v960_v50, %v847_v54 }
  0xe6   : > { %v859_v31 = vpop.f32.mrf.mxu0  ;;  %v1291_v61 = vpop.permute.xlu1 %1290  ;;  %v1011_v18 = vmul.f32 %v1010_v24, %v977_v28 }
  0xe7   : > { %v973_v34 = vadd.f32 %v965_v27, %v868_v29  ;;  %v860_v35 = vadd.f32 %v859_v31, %v660_v55  ;;  %v1021_v21 = vadd.f32 %v1013_v60, %v969_v59  ;;  %v695_v27 = vpop.permute.xlu0 %694  ;;  %v1030_v9 = vmax.f32 %v1022_v12, 0.0 }
  0xe8   : > { %v1928_v40 = vpop.f32.mrf.mxu0  ;;  %v1020_v30 = vadd.f32 %v1012_v7, %v968_v6 }
  0xe9   : > { %v971_v43 = vadd.f32 %v963_v32, %v860_v35  ;;  %v871_v44 = vadd.f32 %v1928_v40, %v675_v62  ;;  %v1025_v51 = vadd.f32 %v1017_v33, %v973_v34  ;;  %v844_v62 = vadd.f32 %v843_v17, %v640_v2  ;;  %v1840_v32 = vld [vmem:[%s2260_s16 + $0x2] sm:$0x3] }
  0xea   : > { %v862_v52 = vpop.f32.mrf.mxu0  ;;  %v1296_v25 = vpop.permute.xlu1 %1295  ;;  %v1029_v34 = vmax.f32 %v1021_v21, 0.0  ;;  %v2289_v24 = vrot.slane %v1840_v32, %v957_v15 }
  0xeb   : > { %v974_v56 = vadd.f32 %v966_v36, %v871_v44  ;;  %v863_v55 = vadd.f32 %v862_v52, %v665_v1  ;;  %v1023_v3 = vadd.f32 %v1015_v42, %v971_v43  ;;  %v1033_v16 = vmax.f32 %v1025_v51, 0.0  ;;  %v2291_v36 = vpop.permute.xlu0 %1059 }
  0xec   : > { %v2278_v63 = vpop.f32.mrf.mxu0  ;;  %v967_v22 = vadd.f32 %v959_v57, %v844_v62  ;;  %v1036_v38 = vpack.c.bf16 %v1030_v9, %v1029_v34  ;;  %v1319_v43 = vmul.f32 %v2289_v24, %v2266_v19  ;;  %v1318_v50 = vmul.f32 %v2289_v24, %v2262_v13 }
  0xed   : > { %v972_v8 = vadd.f32 %v964_v41, %v863_v55  ;;  %v1026_v10 = vadd.f32 %v1018_v37, %v974_v56  ;;  %v1031_v2 = vmax.f32 %v1023_v3, 0.0  ;;  %v1028_v37 = vmax.f32 %v1020_v30, 0.0 }
  0xee   : > { %v2280_v14 = vpop.f32.mrf.mxu0  ;;  %v1019_v35 = vadd.f32 %v1011_v18, %v967_v22  ;;  %v2295_v41 = vrot.slane %v1840_v32, %v1009_v20  ;;  %v1317_v20 = vmul.f32 %v2289_v24, %v1296_v25  ;;  %v1316_v51 = vmul.f32 %v2289_v24, %v1291_v61 }
  0xef   : > { %v1024_v1 = vadd.f32 %v1016_v53, %v972_v8  ;;  %v1034_v58 = vmax.f32 %v1026_v10, 0.0  ;;  %v1350_v28 = vpop.permute.xlu1 %1349  ;;  %v2299_v15 = vpop.permute.xlu0 %684 }
  0xf0   : > { %v2282_v5 = vpop.f32.mrf.mxu0  ;;  %v1027_v40 = vmax.f32 %v1019_v35, 0.0  ;;  %v1371_v11 = vmul.f32 %v2295_v41, %v2273_v26  ;;  %v1369_v13 = vmul.f32 %v2295_v41, %v1350_v28 }
  0xf1   : > { %v1032_v17 = vmax.f32 %v1024_v1, 0.0  ;;  %v1038_v23 = vpack.c.bf16 %v1034_v58, %v1033_v16 }
  0xf2   : > { %v2284_v29 = vpop.f32.mrf.mxu0  ;;  %v1035_v47 = vpack.c.bf16 %v1028_v37, %v1027_v40 }
  0xf3   : > { %1937 = vmatprep.subr.bf16.mxu1 %v1038_v23  ;;  %v1037_v31 = vpack.c.bf16 %v1032_v17, %v1031_v2  ;;  %v2307_v54 = vpop.permute.xlu0 %1049 }
  0xf4   : > { %1938 = vmatpush3.bf16.msra.mxu1 %v1038_v23  ;;  %v1935_v33 = vpop.f32.mrf.mxu0  ;;  %v690_v48 = vpop.permute.xlu1 %689 }
  0xf5   : > { %1939 = vmatprep.subr.bf16.mxu1 %v1037_v31  ;;  %v900_v52 = vadd.f32 %v1935_v33, %v2250_v4  ;;  %v884_v3 = vadd.f32 %v2278_v63, %v690_v48 }
  0xf6   : > { %v891_v39 = vpop.f32.mrf.mxu0 }
  0xf7   : > { %v892_v53 = vadd.f32 %v891_v39, %v2275_v45  ;;  %v1326_v59 = vadd.f32 %v1318_v50, %v900_v52  ;;  %v1354_v4 = vpop.permute.xlu0 %1353  ;;  %v887_v45 = vadd.f32 %v2282_v5, %v695_v27 }
  0xf8   : > { %1940 = vmatpush3.bf16.msra.mxu1 %v1037_v31  ;;  %v1936_v42 = vpop.f32.mrf.mxu0  ;;  %v1281_v55 = vpop.permute.xlu1 %1280  ;;  %v1370_v62 = vmul.f32 %v2295_v41, %v1354_v4 }
  0xf9   : > { %1941 = vmatprep.subr.bf16.mxu1 %v1036_v38  ;;  %v903_v44 = vadd.f32 %v1936_v42, %v715_v46  ;;  %v2037_v46 = vld [vmem:[%s2231_s12 + $0x8] sm:$0xff]   ;;  %v1324_v8 = vadd.f32 %v1316_v51, %v892_v53  ;;  %v1314_v10 = vmul.f32 %v2289_v24, %v1281_v55  ;;  %v879_v42 = vadd.f32 %v2284_v29, %v2299_v15  ;;  %v2038_v29 = vld [vmem:[%s2231_s12 + $0x10] sm:$0xff]   ;;  %v2039_v15 = vld [vmem:[%s2231_s12 + $0x18] sm:$0xff]  }
  0xfa   : > { %v894_v49 = vpop.f32.mrf.mxu0  ;;  %v1378_v61 = vadd.f32 %v1370_v62, %v1326_v59  ;;  %1971 = vmatprep.mubr.msk.bf16.mxu0 %vm1077_vm2, %v2038_v29  ;;  %v1855_v55 = vld [vmem:[%s2217_s27 + $0x30] sm:$0xff]  ;;  %v1853_v51 = vld [vmem:[%s2217_s27 + $0x20] sm:$0xff]  ;;  %v1856_v53 = vld [vmem:[%s2217_s27 + $0x38] sm:$0xff] }
  0xfb   : > { %v1327_v19 = vadd.f32 %v1319_v43, %v903_v44  ;;  %v895_v56 = vadd.f32 %v894_v49, %v705_v0  ;;  %v1346_v1 = vpop.permute.xlu0 %1345  ;;  %v1322_v21 = vadd.f32 %v1314_v10, %v884_v3  ;;  %v1854_v59 = vld [vmem:[%s2217_s27 + $0x28] sm:$0xff] }
  0xfc   : > { %1942 = vmatpush3.bf16.msra.mxu1 %v1036_v38  ;;  %v1286_v57 = vpop.permute.xlu1 %1285  ;;  %v1386_v16 = vmax.f32 %v1378_v61, 0.0  ;;  %v1368_v58 = vmul.f32 %v2295_v41, %v1346_v1 }
  0xfd   : > { %1943 = vmatprep.subr.bf16.mxu1 %v1035_v47  ;;  %v1379_v60 = vadd.f32 %v1371_v11, %v1327_v19  ;;  %v1325_v26 = vadd.f32 %v1317_v20, %v895_v56  ;;  %v1315_v7 = vmul.f32 %v2289_v24, %v1286_v57  ;;  %v1207_v57 = vld [vmem:[%s590_s14] sm:$0x7] }
  0xfe   : > { %v1376_v63 = vadd.f32 %v1368_v58, %v1324_v8 }
  0xff   : > { %v1387_v0 = vmax.f32 %v1379_v60, 0.0  ;;  %v1377_v12 = vadd.f32 %v1369_v13, %v1325_v26  ;;  %v1323_v2 = vadd.f32 %v1315_v7, %v887_v45  ;;  %v1338_v17 = vpop.permute.xlu0 %1337  ;;  %v1863_v13 = vld [vmem:[%s578_s26 + $0x10] sm:$0xff]  ;;  %v1868_v60 = vld [vmem:[%s590_s14 + $0x4] sm:$0x7]  ;;  %v1864_v26 = vld [vmem:[%s578_s26 + $0x18] sm:$0xff] }
 0x100   : > { %1944 = vmatpush3.bf16.msra.mxu1 %v1035_v47  ;;  %v2319_v6 = vpop.permute.xlu1 %1064  ;;  %v1384_v25 = vmax.f32 %v1376_v63, 0.0  ;;  %v1366_v9 = vmul.f32 %v2295_v41, %v1338_v17 }
 0x101   : > { %v1391_v18 = vpack.c.bf16 %v1387_v0, %v1386_v16  ;;  %v1385_v22 = vmax.f32 %v1377_v12, 0.0 }
 0x102   : > { %v1374_v27 = vadd.f32 %v1366_v9, %v1322_v21 }
 0x103   : > { %1946 = vmatmul.mubr.msk.bf16.vlgmr.msra.gmra.mxu1 %vm1077_vm2, %v2037_v46  ;;  %1963 = vmatprep.subr.bf16.mxu0 %v1391_v18  ;;  %v1390_v30 = vpack.c.bf16 %v1385_v22, %v1384_v25  ;;  %v1330_v40 = vpop.permute.xlu0 %1329  ;;  %v1142_v46 = vld [vmem:[%s578_s26 + $0x8] sm:$0xff] }
 0x104   : > { %1964 = vmatpush3.bf16.msra.mxu0 %v1391_v18  ;;  %v1382_v32 = vmax.f32 %v1374_v27, 0.0  ;;  %v1364_v48 = vmul.f32 %v2295_v41, %v1330_v40  ;;  %1150 = vperm.xlu0 %2023, %v1142_v46   ;;  %v2040_v18 = vld [vmem:[%s2342_s22] sm:$0xff]  }
 0x105   : > { %v1342_v23 = vpop.permute.xlu1 %1341  ;;  %1965 = vmatprep.subr.bf16.mxu0 %v1390_v30 }
 0x106   : > { %v1367_v5 = vmul.f32 %v2295_v41, %v1342_v23 }
 0x108   : > { %v1375_v31 = vadd.f32 %v1367_v5, %v1323_v2  ;;  %1966 = vmatpush3.bf16.msra.mxu0 %v1390_v30  ;;  %1404 = vperm.xlu0 %2023, %v1853_v51  }
 0x10a   : > { %v1383_v33 = vmax.f32 %v1375_v31, 0.0  ;;  %v680_v34 = vpop.permute.xlu1 %679 }
 0x10b   : > { %v876_v37 = vadd.f32 %v2280_v14, %v680_v34 }
 0x10c   : > { %v1389_v35 = vpack.c.bf16 %v1383_v33, %v1382_v32  ;;  %1501 = vperm.xlu0 %2023, %v1863_v13  }
 0x10e   : > { %v1271_v28 = vpop.permute.xlu1 %1270  ;;  %1967 = vmatprep.subr.bf16.mxu0 %v1389_v35 }
 0x10f   : > { %1968 = vmatpush3.bf16.msra.mxu0 %v1389_v35  ;;  %v1312_v38 = vmul.f32 %v2289_v24, %v1271_v28 }
 0x110   : > { %1567 = vperm.xlu0 %2023, %v1868_v60  }
 0x111   : > { %v1320_v43 = vadd.f32 %v1312_v38, %v876_v37 }
 0x112   : > { %v1276_v39 = vpop.permute.xlu1 %1275 }
 0x113   : > { %v1313_v44 = vmul.f32 %v2289_v24, %v1276_v39  ;;  %v1372_v50 = vadd.f32 %v1364_v48, %v1320_v43  ;;  %v2054_v24 = vmov 0.0  }
 0x114   : > { %1949 = vmatprep.subr.bf16.mxu1 %v2054_v24  ;;  %1953 = vmatprep.mubr.msk.bf16.mxu1 %vm2055_vm3, %v2054_v24 }
 0x115   : > { %v1321_v49 = vadd.f32 %v1313_v44, %v879_v42  ;;  %v1380_v20 = vmax.f32 %v1372_v50, 0.0  ;;  %v1206_v44 = vld [vmem:[%s2371_s15] sm:$0x3] }
 0x116   : > { %v1055_v47 = vpop.permute.xlu1 %1054 }
 0x11b   : > { %v1334_v11 = vpop.permute.xlu1 %1333 }
 0x11c   : > { %v1365_v14 = vmul.f32 %v2295_v41, %v1334_v11  ;;  %v1141_v41 = vld [vmem:[%s578_s26] sm:$0xff]  ;;  %v2041_v11 = vld [vmem:[%s2342_s22 + $0x8] sm:$0xff]  }
 0x11d   : > { %1145 = vperm.xlu1 %2022, %v1141_v41  }
 0x11e   : > { %v1373_v52 = vadd.f32 %v1365_v14, %v1321_v49 }
 0x120   : > { %v1381_v19 = vmax.f32 %v1373_v52, 0.0 }
 0x121   : > { %1414 = vperm.xlu1 %2022, %v1855_v55  }
 0x122   : > { %v1388_v56 = vpack.c.bf16 %v1381_v19, %v1380_v20 }
 0x124   : > { %1969 = vmatprep.subr.bf16.mxu0 %v1388_v56 }
 0x125   : > { %1970 = vmatpush3.bf16.msra.mxu0 %v1388_v56  ;;  %1419 = vperm.xlu1 %2022, %v1856_v53  }
 0x128   : > { %1972 = vmatmul.mubr.msk.bf16.vlgmr.msra.gmra.mxu0 %vm1077_vm2, %v2039_v15 }
 0x129   : > { %1409 = vperm.xlu1 %2022, %v1854_v59  }
 0x12d   : > { %1506 = vperm.xlu1 %2022, %v1864_v26   ;;  %v1867_v26 = vld [vmem:[%s2371_s15 + $0x2] sm:$0x3] }
 0x131   : > { %1210 = vperm.xlu1 %2022, %v1207_v57  }
 0x17f   : > { %v1151_v17 = vpop.permute.xlu0 %1150 }
 0x183   : > { %v1405_v38 = vpop.permute.xlu0 %1404 }
 0x187   : > { %v1502_v29 = vpop.permute.xlu0 %1501 }
 0x1c3   : > { %v1947_v4 = vpop.f32.mrf.mxu1 }
 0x1c4   : > { %v1127_v3 = vadd.f32 %v1947_v4, %v2291_v36  ;;  %v1146_v36 = vpop.permute.xlu1 %1145 }
 0x1c5   : > { %v1118_v62 = vpop.f32.mrf.mxu1 }
 0x1c6   : > { %v1135_v61 = vmax.f32 %v1127_v3, 0.0  ;;  %v1119_v12 = vadd.f32 %v1118_v62, %v2307_v54 }
 0x1c7   : > { %v1948_v8 = vpop.f32.mrf.mxu1 }
 0x1c8   : > { %v1130_v10 = vadd.f32 %v1948_v8, %v2319_v6  ;;  %v1133_v58 = vmax.f32 %v1119_v12, 0.0  ;;  %v1415_v6 = vpop.permute.xlu1 %1414 }
 0x1c9   : > { %v1121_v0 = vpop.f32.mrf.mxu1 }
 0x1ca   : > { %v1136_v45 = vmax.f32 %v1130_v10, 0.0  ;;  %v1122_v7 = vadd.f32 %v1121_v0, %v1055_v47 }
 0x1cc   : > { %v1138_v1 = vpack.c.bf16 %v1136_v45, %v1135_v61  ;;  %v1134_v16 = vmax.f32 %v1122_v7, 0.0  ;;  %v1420_v2 = vpop.permute.xlu1 %1419 }
 0x1ce   : > { %1950 = vmatpush3.bf16.msra.mxu1 %v1138_v1  ;;  %v1137_v21 = vpack.c.bf16 %v1134_v16, %v1133_v58 }
 0x1cf   : > { %1951 = vmatprep.subr.bf16.mxu1 %v2054_v24 }
 0x1d0   : > { %v1410_v28 = vpop.permute.xlu1 %1409 }
 0x1d2   : > { %1952 = vmatpush3.bf16.msra.mxu1 %v1137_v21 }
 0x1d3   : > { %1957 = vmatprep.subr.bf16.mxu1 %v2054_v24 }
 0x1d4   : > { %v1507_v46 = vpop.permute.xlu1 %1506 }
 0x1d5   : > { %1954 = vmatmul.mubr.msk.bf16.vlgmr.msra.gmra.mxu1 %vm1158_vm4, %v2040_v18 }
 0x1d6   : > { %1959 = vmatprep.mubr.msk.bf16.mxu1 %vm2055_vm3, %v2054_v24 }
 0x1d8   : > { %v1211_v62 = vpop.permute.xlu1 %1210 }
 0x1e8   : > { %v1973_v54 = vpop.f32.mrf.mxu0 }
 0x1e9   : > { %v1481_v5 = vadd.f32 %v1973_v54, %v1415_v6 }
 0x1ea   : > { %v1472_v22 = vpop.f32.mrf.mxu0 }
 0x1eb   : > { %v1489_v37 = vmax.f32 %v1481_v5, 0.0  ;;  %v1473_v39 = vadd.f32 %v1472_v22, %v1405_v38 }
 0x1ec   : > { %v1974_v23 = vpop.f32.mrf.mxu0 }
 0x1ed   : > { %v1484_v30 = vadd.f32 %v1974_v23, %v1420_v2  ;;  %v1487_v47 = vmax.f32 %v1473_v39, 0.0 }
 0x1ee   : > { %v1475_v32 = vpop.f32.mrf.mxu0 }
 0x1ef   : > { %v1490_v40 = vmax.f32 %v1484_v30, 0.0  ;;  %v1476_v42 = vadd.f32 %v1475_v32, %v1410_v28 }
 0x1f1   : > { %v1492_v48 = vpack.c.bf16 %v1490_v40, %v1489_v37  ;;  %v1488_v49 = vmax.f32 %v1476_v42, 0.0 }
 0x1f3   : > { %v1491_v50 = vpack.c.bf16 %v1488_v49, %v1487_v47 }
 0x295   : > { %v1196_v63 = vpop.f32.mrf.mxu1 }
 0x296   : > { %v1197_v9 = vadd.f32 %v1196_v63, %v1146_v36 }
 0x297   : > { %v1955_v25 = vpop.f32.mrf.mxu1 }
 0x298   : > { %v1203_v34 = vmax.f32 %v1197_v9, 0.0 }
 0x299   : > { %v1199_v27 = vpop.f32.mrf.mxu1 }
 0x29a   : > { %v1200_v31 = vadd.f32 %v1199_v27, %v1151_v17 }
 0x29b   : > { %v1956_v33 = vpop.f32.mrf.mxu1 }
 0x29c   : > { %v1204_v35 = vmax.f32 %v1200_v31, 0.0 }
 0x29e   : > { %v1205_v43 = vpack.c.bf16 %v1204_v35, %v1203_v34 }
 0x2a0   : > { %1958 = vmatpush3.bf16.msra.mxu1 %v1205_v43 }
 0x2a1   : > { %1975 = vmatprep.subr.bf16.mxu1 %v2054_v24 }
 0x2a3   : > { %1960 = vmatmul.mubr.msk.bf16.vlgmr.msra.gmra.mxu1 %vm1213_vm5, %v1206_v44 }
 0x2a4   : > { %1976 = vmatpush3.bf16.msra.mxu1 %v1492_v48  ;;  %1979 = vmatprep.mubr.msk.bf16.mxu1 %vm2055_vm3, %v2054_v24 }
 0x2a5   : > { %1977 = vmatprep.subr.bf16.mxu1 %v2054_v24 }
 0x2a8   : > { %1978 = vmatpush3.bf16.msra.mxu1 %v1491_v50 }
 0x2a9   : > { %1983 = vmatprep.subr.bf16.mxu1 %v2054_v24 }
 0x2ab   : > { %1980 = vmatmul.mubr.msk.bf16.vlgmr.msra.gmra.mxu1 %vm1158_vm4, %v2041_v11 }
 0x2ac   : > { %1985 = vmatprep.mubr.msk.bf16.mxu1 %vm2055_vm3, %v2054_v24  ;;  %v1568_v24 = vpop.permute.xlu0 %1567 }
 0x363   : > { %v1251_v14 = vpop.f32.mrf.mxu1 }
 0x364   : > { %v1252_v8 = vadd.f32 %v1251_v14, %v1211_v62 }
 0x365   : > { %v1961_v20 = vpop.f32.mrf.mxu1 }
 0x367   : > { %v1254_v52 = vpop.f32.mrf.mxu1 }
 0x369   : > { %v1962_v19 = vpop.f32.mrf.mxu1 }
 0x36b   : > { %v1551_v56 = vpop.f32.mrf.mxu1 }
 0x36c   : > { %v1552_v41 = vadd.f32 %v1551_v56, %v1502_v29 }
 0x36d   : > { %v1981_v15 = vpop.f32.mrf.mxu1 }
 0x36e   : > { %v1558_v13 = vmax.f32 %v1552_v41, 0.0 }
 0x36f   : > { %v1554_v55 = vpop.f32.mrf.mxu1 }
 0x370   : > { %v1555_v51 = vadd.f32 %v1554_v55, %v1507_v46 }
 0x371   : > { %v1982_v53 = vpop.f32.mrf.mxu1 }
 0x372   : > { %v1559_v59 = vmax.f32 %v1555_v51, 0.0 }
 0x374   : > { %v1560_v60 = vpack.c.bf16 %v1559_v59, %v1558_v13 }
 0x376   : > { %1984 = vmatpush3.bf16.msra.mxu1 %v1560_v60 }
 0x379   : > { %1986 = vmatmul.mubr.msk.bf16.vlgmr.msra.gmra.mxu1 %vm1213_vm5, %v1867_v26 }
 0x439   : > { %v1607_v57 = vpop.f32.mrf.mxu1 }
 0x43a   : > { %v1608_v4 = vadd.f32 %v1607_v57, %v1568_v24 }
 0x43b   : > { %v1987_v3 = vpop.f32.mrf.mxu1 }
 0x43c   : > { %v1614_v10 = vrot.slane %v1608_v4, 5 }
 0x43d   : > { %v1610_v0 = vpop.f32.mrf.mxu1 }
 0x43e   : > { %v1617_v61 = vsel %vm1616_vm6, %v1252_v8, %v1614_v10 }
 0x43f   : > { %2042 = vtanh.f32 %v1617_v61  ;;  %v1988_v12 = vpop.f32.mrf.mxu1 }
 0x44c   : > { %v2043_v45 = vpop.eup %2042 }
 0x44d   : > { %1620 = vst.msk [vmem:[%s595_s19] sm:$0x3f] %vm1619_vm7, %v2043_v45 }
 0x44e PF: > { %s21_s17 = sadd.s32 1, %s2050_s17  }
 0x44f   : > { %p18_p5 = scmp.ge.s32.totalorder %s21_s17, 6  }
 0x451   :  { %20 = sbr.rel (!%p18_p5) target bundleno = 1 (0x1), region = 129 }

</bundles_post_ra>
